<compile_context>
chip_gen: v5e
topology: v5e:2x2
jax: 0.10.0
libtpu: 0.0.40
codegen_flags: <defaults>
</compile_context>

<pallas_src>
import math

import jax
import jax.numpy as jnp
from jax.experimental import pallas as pl
from jax.experimental.pallas import tpu as pltpu


def _copy_kernel(x_ref, o_ref):
    # Pure data movement: one (TM, D) lane-dense tile per grid step.
    o_ref[...] = x_ref[...]


def _tile_rows(B: int, D: int, itemsize: int) -> int:
    """Rows per block: as big as fits a 4 MiB tile budget, multiple of 8.

    2 arrays (in + out) * 2 pipeline buffers * 4 MiB = 16 MiB total VMEM,
    which fits the default scoped-VMEM limit on v5e (16 MiB) and v6e/v7x
    (32 MiB), with ample headroom on v7x's 64 MiB physical VMEM.
    """
    budget = 4 * 1024 * 1024
    rows = (budget // max(D * itemsize, 1)) // 8 * 8
    rows = max(rows, 8)
    if B <= rows:
        return B  # full batch extent is always a legal second-to-last block dim
    return rows   # multiple of 8; ragged tail block handled by Pallas


def lin_to_conv(feat: jax.Array, n_channels: int, *, materialize: bool = False) -> jax.Array:
    """Pallas equivalent of LinToConv.forward.

    feat: (B, D) with D == n_channels * width * width
    returns: (B, n_channels, width, width)

    materialize=False (default): zero-cost metadata reshape (recommended —
    matches torch .view exactly, zero HBM traffic).
    materialize=True: run the tiled Pallas identity-copy kernel, then reshape.
    """
    B, D = feat.shape
    width = math.isqrt(D // n_channels)
    assert n_channels * width * width == D, "input_dim must equal C*W*W"

    if not materialize:
        # .view() equivalent: free metadata reshape — the ideal implementation.
        return feat.reshape(B, n_channels, width, width)

    TM = _tile_rows(B, D, jnp.dtype(feat.dtype).itemsize)

    flat = pl.pallas_call(
        _copy_kernel,
        out_shape=jax.ShapeDtypeStruct((B, D), feat.dtype),
        grid_spec=pltpu.PrefetchScalarGridSpec(
            num_scalar_prefetch=0,
            grid=(pl.cdiv(B, TM),),
            in_specs=[pl.BlockSpec((TM, D), lambda b: (b, 0))],
            out_specs=pl.BlockSpec((TM, D), lambda b: (b, 0)),
        ),
        compiler_params=pltpu.CompilerParams(
            dimension_semantics=("parallel",)),
        # Reuse the (donated) input HBM allocation for the output.
        input_output_aliases={0: 0},
    )(feat)

    # Trailing .view() equivalent (metadata only).
    return flat.reshape(B, n_channels, width, width)


if __name__ == "__main__":
    key = jax.random.PRNGKey(0)

    # Small shapes consistent with the module: input_dim = C*W*W = 4*16*16 = 1024
    B, C, W = 2, 4, 16
    D = C * W * W
    feat = jax.random.normal(key, (B, D), dtype=jnp.float32)
    ref = jnp.reshape(feat, (B, C, W, W))

    # Default (recommended) path: pure metadata reshape, zero HBM traffic.
    out_fast = jax.block_until_ready(lin_to_conv(feat, n_channels=C))
    assert out_fast.shape == (B, C, W, W) and out_fast.dtype == feat.dtype
    assert bool(jnp.array_equal(out_fast, ref)), "reshape path mismatch"

    # Materialized Pallas path (donate the input so the alias actually holds).
    kernel_fn = jax.jit(
        lambda x: lin_to_conv(x, n_channels=C, materialize=True),
        donate_argnums=0)
    out_kernel = jax.block_until_ready(kernel_fn(feat.copy()))
    assert out_kernel.shape == (B, C, W, W) and out_kernel.dtype == feat.dtype
    assert bool(jnp.array_equal(out_kernel, ref)), "pallas copy path mismatch"

    # Exercise the multi-row tiling path with a slightly larger batch.
    B2 = 16
    feat2 = jax.random.normal(jax.random.PRNGKey(1), (B2, D), dtype=jnp.float32)
    ref2 = jnp.reshape(feat2, (B2, C, W, W))
    kernel_fn2 = jax.jit(
        lambda x: lin_to_conv(x, n_channels=C, materialize=True),
        donate_argnums=0)
    out2 = jax.block_until_ready(kernel_fn2(feat2.copy()))
    assert bool(jnp.array_equal(out2, ref2)), "pallas copy path mismatch (B=16)"

    print("KERNEL_OK")
</pallas_src>

<mosaic_0001>
module attributes {stable_mosaic.version = 11 : i64} {
  func.func @_copy_kernel(%arg0: i32, %arg1: memref<2x1024xf32, #tpu.memory_space<vmem>>, %arg2: memref<2x1024xf32, #tpu.memory_space<vmem>>) attributes {dimension_semantics = [#tpu.dimension_semantics<parallel>], iteration_bounds = array<i64: 1>, scalar_prefetch = 0 : i64, scratch_operands = 0 : i64, tpu.core_type = #tpu.core_type<tc>, window_params = [{transform_indices = @transform_0, window_bounds = array<i64: 2, 1024>}, {transform_indices = @transform_1, window_bounds = array<i64: 2, 1024>}]} {
    %c0 = arith.constant 0 : index
    %c0_0 = arith.constant 0 : index
    %0 = vector.load %arg1[%c0, %c0_0] : memref<2x1024xf32, #tpu.memory_space<vmem>>, vector<2x1024xf32>
    %c0_1 = arith.constant 0 : index
    %c0_2 = arith.constant 0 : index
    %1 = vector.load %arg2[%c0_1, %c0_2] : memref<2x1024xf32, #tpu.memory_space<vmem>>, vector<2x1024xf32>
    tpu.vector_store %arg2[%c0_1, %c0_2], %0 {strides = array<i32>} : memref<2x1024xf32, #tpu.memory_space<vmem>>, vector<2x1024xf32>,
    return
  }
  func.func @transform_0(%arg0: i32) -> (i32, i32) {
    %c0_i32 = arith.constant 0 : i32
    %c0_i32_0 = arith.constant 0 : i32
    return %arg0, %c0_i32 : i32, i32
  }
  func.func @transform_1(%arg0: i32) -> (i32, i32) {
    %c0_i32 = arith.constant 0 : i32
    %c0_i32_0 = arith.constant 0 : i32
    return %arg0, %c0_i32 : i32, i32
  }
}

</mosaic_0001>

<bundles_post_ra>
// kernel: _lambda_.1
= control target key start
LH: loop header
LB: loop body
LE: loop exit
PB: predicated region body
PF: predicated region fallthrough
CT: control target
= control target key end

     0   :  { %s38_s0 = inlined_call_operand.vmem [shape: f32[2,1024], index: 0, kind: input, shape index: {}, may-alias: {0,1}]   ;;  %s39_s1 = inlined_call_operand.vmem [shape: f32[2,1024], index: 1, kind: output, shape index: {}, may-alias: {0,1}]  }
   0x1   :  { %v8_v0 = vld [vmem:[%s38_s0] sm:$0xff]  ;;  %v9_v1 = vld [vmem:[%s38_s0 + $0x8] sm:$0xff] }
   0x2   :  { %10 = vst [vmem:[%s39_s1] sm:$0xff] %v8_v0 }
   0x3   :  { %11 = vst [vmem:[%s39_s1 + $0x8] sm:$0xff] %v9_v1 }

</bundles_post_ra>
